<compile_context>
chip_gen: v7x
topology: tpu7x:2x2x1
jax: 0.10.0
libtpu: 0.0.40
codegen_flags: <defaults>
</compile_context>

<pallas_src>
import jax
import jax.numpy as jnp
from jax.experimental import pallas as pl
from jax.experimental.pallas import tpu as pltpu

EPS = 1e-6
_LANE_CANDIDATES = (2048, 1024, 512, 256, 128)   # lane-dense widths (multiples of 128)
_TARGET_BLOCK_BYTES = 2 * 1024 * 1024            # ~2 MiB per buffer


def _sublane(dtype) -> int:
    """Sublane packing count for a dtype (rows per (sublane,128) VMEM tile)."""
    itemsize = jnp.dtype(dtype).itemsize
    return {4: 8, 2: 16, 1: 32}.get(itemsize, 8)


def _kumar_kernel(ab_ref, x_ref, o_ref):
    # ab_ref: SMEM (2,) f32 -> [softplus(alpha_raw), softplus(beta_raw)] (precomputed)
    # x_ref / o_ref: VMEM tiles of shape (block_rows, width), original dtype.
    alpha = ab_ref[0]
    beta = ab_ref[1]

    x = x_ref[...].astype(jnp.float32)
    x = jnp.clip(x, EPS, 1.0 - EPS)
    # Same exp/log chain torch.pow lowers to, so we match the PyTorch forward
    # (including its cancellation behaviour near x -> 1 - eps).  Both bases
    # are strictly positive after the clip, so log is well defined.
    # TODO(synk): switch to an expm1/log1p form if accuracy at the edges is
    # preferred over bit-level fidelity with the torch reference.
    t = jnp.exp(alpha * jnp.log(x))                 # x ** alpha, in (0, 1)
    res = 1.0 - jnp.exp(beta * jnp.log(1.0 - t))    # 1 - (1 - t) ** beta
    o_ref[...] = res.astype(o_ref.dtype)


def _kumar_jnp(x, alpha, beta):
    """Plain-jnp version, used only for the <128-element ragged tail."""
    xc = jnp.clip(x.astype(jnp.float32), EPS, 1.0 - EPS)
    t = jnp.exp(alpha * jnp.log(xc))
    return (1.0 - jnp.exp(beta * jnp.log(1.0 - t))).astype(x.dtype)


def _run_pallas(x2d: jax.Array, params: jax.Array, block_rows: int) -> jax.Array:
    rows, width = x2d.shape
    itemsize = jnp.dtype(x2d.dtype).itemsize
    n = rows * width
    return pl.pallas_call(
        _kumar_kernel,
        out_shape=jax.ShapeDtypeStruct((rows, width), x2d.dtype),
        grid=(pl.cdiv(rows, block_rows),),
        in_specs=[
            pl.BlockSpec(memory_space=pltpu.SMEM),                 # scalar params
            pl.BlockSpec((block_rows, width), lambda i: (i, 0)),   # x tile
        ],
        out_specs=pl.BlockSpec((block_rows, width), lambda i: (i, 0)),
        compiler_params=pltpu.CompilerParams(
            dimension_semantics=("parallel",)),
        cost_estimate=pl.CostEstimate(
            flops=6 * n,
            transcendentals=4 * n,
            bytes_accessed=2 * n * itemsize),
    )(params, x2d)


def kumar_warp(x: jax.Array, alpha_raw: jax.Array, beta_raw: jax.Array) -> jax.Array:
    """Pallas implementation of KumarWarp.forward. x: any shape, float dtype."""
    orig_shape = x.shape
    orig_dtype = x.dtype
    n = x.size
    if n == 0:
        return x
    flat = x.reshape(-1)  # keep original dtype in HBM; cast happens in-kernel

    # Hoist the O(1) scalar softplus out of the kernel.
    alpha = jax.nn.softplus(alpha_raw.reshape(()).astype(jnp.float32))
    beta = jax.nn.softplus(beta_raw.reshape(()).astype(jnp.float32))
    params = jnp.stack([alpha, beta])

    sub = _sublane(orig_dtype)
    itemsize = jnp.dtype(orig_dtype).itemsize

    # Widest lane-dense width that divides N exactly *and* leaves at least
    # `sub` rows (so (sublane, lane) tiles are not mostly padding).
    width = None
    for cand in _LANE_CANDIDATES:
        if n % cand == 0 and n // cand >= sub:
            width = cand
            break

    tail = 0
    if width is not None:
        n_main = n
    elif n >= 128:
        # Awkward N: Pallas on the 128-aligned prefix, tiny tail in plain jnp.
        # Avoids the whole-array pad + output-slice extra HBM passes.
        width = 128
        n_main = (n // 128) * 128
        tail = n - n_main
    else:
        # Degenerate tiny input: single full-array block (legal: block == dims).
        width = n
        n_main = n

    rows = n_main // width
    x2d = flat[:n_main].reshape(rows, width)

    # Byte-budgeted block rows (~2 MiB/buffer), rounded to the sublane multiple.
    # With default double buffering: 4 buffers * 2 MiB = 8 MiB, safe on
    # v5e (16 MiB scoped), v6e (32 MiB scoped) and v7x (64 MiB physical).
    budget_rows = max(sub, (_TARGET_BLOCK_BYTES // (width * itemsize)) // sub * sub)
    if rows <= sub:
        block_rows = rows  # block equals full dim -> always a legal layout
    else:
        # Cap so the "parallel" grid axis has >= 2 steps: lets v7x shard the
        # grid across its 2 TensorCores (no effect on v5e/v6e).
        two_step_cap = ((pl.cdiv(rows, 2) + sub - 1) // sub) * sub
        block_rows = max(sub, min(budget_rows, two_step_cap))

    out2d = _run_pallas(x2d, params, block_rows)

    if tail:
        tail_out = _kumar_jnp(flat[n_main:], alpha, beta)
        out = jnp.concatenate([out2d.reshape(-1), tail_out]).reshape(orig_shape)
    else:
        out = out2d.reshape(orig_shape)
    return out


def _kumar_ref(x, alpha_raw, beta_raw):
    """Pure-JAX reference matching the PyTorch forward."""
    xc = jnp.clip(x.astype(jnp.float32), EPS, 1.0 - EPS)
    alpha = jax.nn.softplus(alpha_raw.astype(jnp.float32))
    beta = jax.nn.softplus(beta_raw.astype(jnp.float32))
    return (1.0 - jnp.power(1.0 - jnp.power(xc, alpha), beta)).astype(x.dtype)


if __name__ == "__main__":
    key = jax.random.PRNGKey(0)
    # Input: NCHW-style tensor of "probabilities" (the warp expects values in [0,1]).
    x = jax.random.uniform(key, (2, 4, 16, 16), dtype=jnp.float32)

    # Deterministic parameter init, matching nn.Parameter(torch.zeros(1)).
    alpha_raw = jnp.zeros((1,), jnp.float32)
    beta_raw = jnp.zeros((1,), jnp.float32)

    out = kumar_warp(x, alpha_raw, beta_raw)
    out = jax.block_until_ready(out)

    ref = _kumar_ref(x, alpha_raw, beta_raw)
    assert out.shape == x.shape and out.dtype == x.dtype
    assert jnp.allclose(out, ref, atol=1e-5, rtol=1e-5), "mismatch vs reference"

    # Exercise the awkward-size (prefix + jnp tail) path as well.
    x_odd = jax.random.uniform(jax.random.PRNGKey(1), (5, 7, 13), dtype=jnp.float32)
    out_odd = jax.block_until_ready(kumar_warp(x_odd, alpha_raw, beta_raw))
    ref_odd = _kumar_ref(x_odd, alpha_raw, beta_raw)
    assert jnp.allclose(out_odd, ref_odd, atol=1e-5, rtol=1e-5), "mismatch (odd size)"

    print("KERNEL_OK")
</pallas_src>

<mosaic_0001>
module attributes {stable_mosaic.version = 11 : i64} {
  func.func @_kumar_kernel(%arg0: i32, %arg1: memref<2xf32, #tpu.memory_space<smem>>, %arg2: memref<8x256xf32, #tpu.memory_space<vmem>>, %arg3: memref<8x256xf32, #tpu.memory_space<vmem>>) attributes {dimension_semantics = [#tpu.dimension_semantics<parallel>], iteration_bounds = array<i64: 1>, scalar_prefetch = 0 : i64, scratch_operands = 0 : i64, tpu.core_type = #tpu.core_type<tc>, window_params = [{transform_indices = @transform_0, window_bounds = array<i64: 2>}, {transform_indices = @transform_1, window_bounds = array<i64: 8, 256>}, {transform_indices = @transform_2, window_bounds = array<i64: 8, 256>}]} {
    %c0 = arith.constant 0 : index
    %0 = memref.load %arg1[%c0] : memref<2xf32, #tpu.memory_space<smem>>
    %c1 = arith.constant 1 : index
    %1 = memref.load %arg1[%c1] : memref<2xf32, #tpu.memory_space<smem>>
    %c0_0 = arith.constant 0 : index
    %c0_1 = arith.constant 0 : index
    %2 = vector.load %arg2[%c0_0, %c0_1] : memref<8x256xf32, #tpu.memory_space<vmem>>, vector<8x256xf32>
    %cst = arith.constant 9.99999997E-7 : f32
    %cst_2 = arith.constant 0.999998986 : f32
    %3 = vector.broadcast %cst : f32 to vector<8x256xf32>
    %4 = arith.maximumf %3, %2 : vector<8x256xf32>
    %5 = vector.broadcast %cst_2 : f32 to vector<8x256xf32>
    %6 = arith.minimumf %5, %4 : vector<8x256xf32>
    %7 = math.log %6 : vector<8x256xf32>
    %8 = vector.broadcast %0 : f32 to vector<8x256xf32>
    %9 = arith.mulf %8, %7 : vector<8x256xf32>
    %10 = math.exp %9 : vector<8x256xf32>
    %cst_3 = arith.constant 1.000000e+00 : f32
    %11 = vector.broadcast %cst_3 : f32 to vector<8x256xf32>
    %12 = arith.subf %11, %10 : vector<8x256xf32>
    %13 = math.log %12 : vector<8x256xf32>
    %14 = vector.broadcast %1 : f32 to vector<8x256xf32>
    %15 = arith.mulf %14, %13 : vector<8x256xf32>
    %16 = math.exp %15 : vector<8x256xf32>
    %cst_4 = arith.constant 1.000000e+00 : f32
    %17 = vector.broadcast %cst_4 : f32 to vector<8x256xf32>
    %18 = arith.subf %17, %16 : vector<8x256xf32>
    %c0_5 = arith.constant 0 : index
    %c0_6 = arith.constant 0 : index
    %19 = vector.load %arg3[%c0_5, %c0_6] : memref<8x256xf32, #tpu.memory_space<vmem>>, vector<8x256xf32>
    tpu.vector_store %arg3[%c0_5, %c0_6], %18 {strides = array<i32>} : memref<8x256xf32, #tpu.memory_space<vmem>>, vector<8x256xf32>,
    return
  }
  func.func @transform_0(%arg0: i32) -> i32 {
    %c0_i32 = arith.constant 0 : i32
    %c0_i32_0 = arith.constant 0 : i32
    return %c0_i32 : i32
  }
  func.func @transform_1(%arg0: i32) -> (i32, i32) {
    %c0_i32 = arith.constant 0 : i32
    %c0_i32_0 = arith.constant 0 : i32
    return %arg0, %c0_i32 : i32, i32
  }
  func.func @transform_2(%arg0: i32) -> (i32, i32) {
    %c0_i32 = arith.constant 0 : i32
    %c0_i32_0 = arith.constant 0 : i32
    return %arg0, %c0_i32 : i32, i32
  }
}

</mosaic_0001>

<bundles_post_ra>
// kernel: tpu_custom_call.1
= control target key start
LH: loop header
LB: loop body
LE: loop exit
PB: predicated region body
PF: predicated region fallthrough
CT: control target
= control target key end

     0   :  { %7 = vsyncpa [#allocation5], 0  ;;  %s221_s0 = inlined_call_operand.hbm [shape: f32[2], index: 0, kind: input, shape index: {}]   ;;  %s222_s1 = inlined_call_operand.hbm [shape: f32[8,256], index: 1, kind: input, shape index: {}]   ;;  %s223_s2 = inlined_call_operand.hbm [shape: f32[8,256], index: 2, kind: output, shape index: {}]  }
   0x1   :  { %8 = vsyncpa [#allocation3], 0 }
   0x2   :  { %9 = vsyncpa [#allocation4], 0  ;;  %s107_s11 = scalar_lea.hbm %s221_s0, 16 }
   0x3   :  { %p108_p0 = scmp.ne.s32.totalorder %s221_s0, %s107_s11  ;;  %p111_p1 = scmp.lt.u32.totalorder %s107_s11, %s221_s0 }
   0x5   :  { %p113_p2 = pnand %p111_p1, %p108_p0 }
   0x7   :  { %116 = shalt.err (!%p113_p2)
}
   0x8   :  { %s167_s16 = smov [#allocation2]   ;;  %s168_s19 = smov [#allocation6]  }
   0x9   :  { %17 = dma.hbm_to_smem %s221_s0, 16, %s167_s16, [#allocation5]  }
   0xa   :  { %s24_s20 = sshll.u32 %s168_s19, 4  ;;  %s117_s23 = scalar_lea.hbm %s222_s1, 256  ;;  %s25_s20 = int_to_ptr.vmem [resolvable:$true] %s24_s20 }
   0xb   :  { %p118_p3 = scmp.ne.s32.totalorder %s222_s1, %s117_s23  ;;  %p121_p4 = scmp.lt.u32.totalorder %s117_s23, %s222_s1 }
   0xd   :  { %p123_p5 = pnand %p121_p4, %p118_p3 }
   0xf   :  { %126 = shalt.err (!%p123_p5)
}
  0x10   :  { %s127_s28 = scalar_lea.vmem %s25_s20, 256  ;;  %p132_p7 = scmp.lt.s32.totalorder %s25_s20, %s25_s20 }
  0x11   :  { %p128_p6 = scmp.ne.s32.totalorder %s25_s20, %s127_s28  ;;  %p133_p8 = scmp.lt.s32.totalorder %s127_s28, %s127_s28 }
  0x13   :  { %p134_p9 = por %p133_p8, %p132_p7 }
  0x15   :  { %p135_p10 = pnand %p134_p9, %p128_p6 }
  0x17   :  { %138 = shalt.err (!%p135_p10)
}
  0x18   :  { %27 = dma.hbm_to_vmem [thread:$0]  %s222_s1, 256, %s25_s20, [#allocation3]  }
  0x19   :  { %161 = dma.done.wait [#allocation5], 16  }
  0x1a   :  { %162 = vsyncadd [#allocation5], 4294967280 }
  0x1b   :  { %163 = dma.done.wait [#allocation3], 256  }
  0x1c   :  { %164 = vsyncadd [#allocation3], 4294967040 }
  0x1d   :  { %34 = sfence }
  0x1e   :  { %v37_v0 = vld [vmem:[#allocation6] sm:$0xff]  ;;  %v38_v1 = vld [vmem:[#allocation6 + $0x8] sm:$0xff]  ;;  %s35_s30 = sld [smem:[#allocation2]]  ;;  %s87_s1 = sld [smem:[#allocation2 + $0x1]] }
  0x1f   :  { %v39_v2 = vmax.f32 %v37_v0, 1e-06  ;;  %v40_v3 = vmax.f32 %v38_v1, 1e-06  ;;  %s169_s3 = smov [#allocation7]  }
  0x20   :  { %s77_s4 = sshll.u32 %s169_s3, 4  ;;  %s78_s4 = int_to_ptr.vmem [resolvable:$true] %s77_s4 }
  0x21   :  { %v41_v4 = vmin.f32 %v39_v2, 0.999999  ;;  %v42_v5 = vmin.f32 %v40_v3, 0.999999  ;;  %s139_s5 = scalar_lea.vmem %s78_s4, 256  ;;  %p144_p12 = scmp.lt.s32.totalorder %s78_s4, %s78_s4 }
  0x22   :  { %p140_p11 = scmp.ne.s32.totalorder %s78_s4, %s139_s5  ;;  %p145_p13 = scmp.lt.s32.totalorder %s139_s5, %s139_s5 }
  0x23   :  { %91 = vlog2.f32 %v41_v4 }
  0x24   :  { %93 = vlog2.f32 %v42_v5  ;;  %v47_v7 = vstv %s35_s30  ;;  %v60_v20 = vstv %s87_s1  ;;  %p146_p0 = por %p145_p13, %p144_p12 }
  0x26   :  { %p147_p1 = pnand %p146_p0, %p140_p11 }
  0x2d   :  { %v92_v6 = vpop.eup %91 }
  0x2e   :  { %v94_v8 = vpop.eup %93  ;;  %v44_v9 = vmul.f32 0.6931472, %v92_v6 }
  0x2f   :  { %v46_v10 = vmul.f32 0.6931472, %v94_v8 }
  0x30   :  { %v48_v11 = vmul.f32 %v47_v7, %v44_v9 }
  0x31   :  { %v49_v12 = vmul.f32 %v47_v7, %v46_v10 }
  0x32   :  { %v50_v13 = vmul.f32 1.442695, %v48_v11 }
  0x33   :  { %v52_v14 = vmul.f32 1.442695, %v49_v12 }
  0x34   :  { %95 = vpow2.f32 %v50_v13 }
  0x35   :  { %97 = vpow2.f32 %v52_v14 }
  0x3e   :  { %v96_v15 = vpop.eup %95 }
  0x3f   :  { %v98_v16 = vpop.eup %97  ;;  %v54_v17 = vsub.f32 1.0, %v96_v15 }
  0x40   :  { %v55_v18 = vsub.f32 1.0, %v98_v16 }
  0x41   :  { %99 = vlog2.f32 %v54_v17 }
  0x42   :  { %101 = vlog2.f32 %v55_v18 }
  0x4b   :  { %v100_v19 = vpop.eup %99 }
  0x4c   :  { %v102_v21 = vpop.eup %101  ;;  %v57_v22 = vmul.f32 0.6931472, %v100_v19 }
  0x4d   :  { %v59_v23 = vmul.f32 0.6931472, %v102_v21 }
  0x4e   :  { %v61_v24 = vmul.f32 %v60_v20, %v57_v22 }
  0x4f   :  { %v62_v25 = vmul.f32 %v60_v20, %v59_v23 }
  0x50   :  { %v63_v26 = vmul.f32 1.442695, %v61_v24 }
  0x51   :  { %v65_v27 = vmul.f32 1.442695, %v62_v25 }
  0x52   :  { %103 = vpow2.f32 %v63_v26 }
  0x53   :  { %105 = vpow2.f32 %v65_v27 }
  0x5c   :  { %v104_v28 = vpop.eup %103 }
  0x5d   :  { %v106_v29 = vpop.eup %105  ;;  %v67_v30 = vsub.f32 1.0, %v104_v28 }
  0x5e   :  { %v68_v31 = vsub.f32 1.0, %v106_v29 }
  0x5f   :  { %69 = vst [vmem:[#allocation7] sm:$0xff] %v67_v30 }
  0x60   :  { %70 = vst [vmem:[#allocation7 + $0x8] sm:$0xff] %v68_v31 }
  0x61   :  { %150 = shalt.err (!%p147_p1)
}
  0x62   :  { %s151_s8 = scalar_lea.hbm %s223_s2, 256 }
  0x63   :  { %p152_p2 = scmp.ne.s32.totalorder %s223_s2, %s151_s8  ;;  %p155_p3 = scmp.lt.u32.totalorder %s151_s8, %s223_s2 }
  0x65   :  { %p157_p4 = pnand %p155_p3, %p152_p2 }
  0x67   :  { %160 = shalt.err (!%p157_p4)
}
  0x68   :  { %80 = dma.vmem_to_hbm [thread:$0]  %s78_s4, 256, %s223_s2, [#allocation4]  }
  0x69   :  { %165 = dma.done.wait [#allocation4], 256  }
  0x6a   :  { %166 = vsyncadd [#allocation4], 4294967040 }
  0x6b   :  { %84 = vsyncpa [#allocation3], 1 }
  0x6c   :  { %85 = vsyncpa [#allocation4], 1 }
  0x6d   :  { %86 = vsyncpa [#allocation5], 1 }

</bundles_post_ra>
